<compile_context>
chip_gen: v7x
topology: tpu7x:2x2x1
jax: 0.10.0
libtpu: 0.0.40
codegen_flags: <defaults>
</compile_context>

<pallas_src>
import functools

import jax
import jax.numpy as jnp
from jax import lax
from jax.experimental import pallas as pl
from jax.experimental.pallas import tpu as pltpu

BN_EPS = 1e-5


def _round_up(x, m):
    return ((x + m - 1) // m) * m


def _cdiv(a, b):
    return (a + b - 1) // b


def _split_padded(dim, tile_cap, *, lane=128, min_tiles=1):
    """Split `dim` into n tiles of size t (multiple of `lane`, t <= ~tile_cap).

    Bounds per-tile zero padding to < `lane` (no padding up to a full
    `tile_cap`).  Returns (n_tiles, tile, padded_dim = n_tiles * tile).
    """
    d = _round_up(dim, lane)
    n = max(_cdiv(d, tile_cap), min_tiles)
    t = _round_up(_cdiv(d, n), lane)
    return n, t, n * t


def _bn_epilogue_f32(y, gamma, beta, *, b_actual, b_pad):
    """Training-mode BatchNorm1d over the batch axis (biased variance), f32.

    Padded batch rows of `y` are exactly zero (zero x rows, no bias), so they
    contribute nothing to the sums; we divide by the true batch size and only
    mask them out of the centered variance when padding actually exists.
    """
    inv_b = jnp.float32(1.0 / b_actual)
    mean = jnp.sum(y, axis=0, keepdims=True) * inv_b
    if b_pad != b_actual:
        row_ids = lax.broadcasted_iota(jnp.int32, y.shape, 0)
        centered = jnp.where(row_ids < b_actual, y - mean, 0.0)
    else:
        centered = y - mean
    var = jnp.sum(centered * centered, axis=0, keepdims=True) * inv_b
    # Fused BN affine: one FMA-shaped pass.
    scale = gamma * lax.rsqrt(var + BN_EPS)
    shift = beta - mean * scale
    return y * scale + shift


def _head_kernel_single(x_ref, w_ref, gb_ref, o_ref, *, b_actual, b_pad):
    """grid = (nE,).  F_in fits in one K tile: no accumulator scratch.

    x_ref:  [B_pad, tk]   (compute dtype, fed to MXU directly)
    w_ref:  [tk, tE]      (pre-transposed weight; E on lanes)
    gb_ref: [2, tE]       row 0 = gamma, row 1 = beta (f32)
    o_ref:  [B_pad, tE]
    """
    y = jnp.dot(x_ref[...], w_ref[...], preferred_element_type=jnp.float32)
    gamma = gb_ref[0:1, :]
    beta = gb_ref[1:2, :]
    o_ref[...] = _bn_epilogue_f32(
        y, gamma, beta, b_actual=b_actual, b_pad=b_pad
    ).astype(o_ref.dtype)


def _head_kernel_acc(x_ref, w_ref, gb_ref, o_ref, acc_ref, *, b_actual, b_pad):
    """grid = (nE, nK).  K (contraction) is the inner reduction axis.

    acc_ref: [B_pad, tE] f32 accumulator scratch (per E tile / per core).
    """
    k = pl.program_id(1)

    @pl.when(k == 0)
    def _init():
        acc_ref[...] = jnp.zeros_like(acc_ref)

    acc_ref[...] += jnp.dot(
        x_ref[...], w_ref[...], preferred_element_type=jnp.float32
    )

    @pl.when(k == pl.num_programs(1) - 1)
    def _finalize():
        gamma = gb_ref[0:1, :]
        beta = gb_ref[1:2, :]
        o_ref[...] = _bn_epilogue_f32(
            acc_ref[...], gamma, beta, b_actual=b_actual, b_pad=b_pad
        ).astype(o_ref.dtype)


def make_base_head(weight, bias, gamma, beta, *, compute_dtype=jnp.bfloat16,
                   tk_cap=1024, tE_cap=512):
    """Build a `forward(x)` closure for BaseHead.

    Weight padding + transpose and the gamma/beta stack are done ONCE here
    (outside the per-call hot path); only x is padded per call.

    `bias` is accepted for API parity with nn.Linear but unused: with
    training-mode BatchNorm immediately after, the per-feature bias is exactly
    cancelled by the batch-mean subtraction.
    """
    del bias
    E, F_in = weight.shape
    in_dtype = jnp.dtype(compute_dtype) if compute_dtype is not None else weight.dtype
    in_isz = jnp.dtype(in_dtype).itemsize

    # E tiling: lane-dense (multiple of 128).  Force >= 2 tiles when E is big
    # enough so the "parallel" E axis can shard across v7x's two TensorCores.
    nE, tE, E_pad = _split_padded(
        E, tE_cap, min_tiles=2 if _round_up(E, 128) >= 4 * 128 else 1
    )
    # K tiling: per-tile zero padding bounded to < 128.
    nK, tk, K_pad = _split_padded(F_in, tk_cap)

    # One-time parameter prep (not in the per-call hot path).
    w_t = jnp.pad(weight.T.astype(in_dtype), ((0, K_pad - F_in), (0, E_pad - E)))
    gamma_p = jnp.pad(gamma.astype(jnp.float32), (0, E_pad - E), constant_values=1.0)
    beta_p = jnp.pad(beta.astype(jnp.float32), (0, E_pad - E))
    gb = jnp.stack([gamma_p, beta_p], axis=0)  # [2, E_pad]

    # Sublane-packing multiple for the compute dtype: 8 (f32), 16 (bf16), 32 (i8).
    sub = 8 * (4 // in_isz)

    @jax.jit
    def forward(x):
        B = x.shape[0]
        out_dtype = x.dtype
        out_isz = jnp.dtype(out_dtype).itemsize
        B_pad = _round_up(B, sub)
        x_p = jnp.pad(x.astype(in_dtype), ((0, B_pad - B), (0, K_pad - F_in)))

        # Explicit VMEM budget: f32 accumulator + double-buffered in/out blocks.
        acc_bytes = B_pad * tE * 4 if nK > 1 else 0
        est = (acc_bytes
               + 2 * B_pad * tk * in_isz       # x blocks
               + 2 * tk * tE * in_isz          # w blocks
               + 2 * B_pad * tE * out_isz      # out blocks
               + 2 * 8 * tE * 4)               # gamma/beta (sublane-padded)
        # TODO(synk): very large B (B_pad*tk past ~the v7x budget) would need a
        # smaller tk_cap or a two-pass B-tiled BatchNorm; not handled here.
        vmem_limit = min(max(int(est * 1.5) + (4 << 20), 32 << 20), 96 << 20)

        if nK == 1:
            kernel = functools.partial(_head_kernel_single, b_actual=B, b_pad=B_pad)
            grid_spec = pltpu.PrefetchScalarGridSpec(
                num_scalar_prefetch=0,
                grid=(nE,),
                in_specs=[
                    pl.BlockSpec((B_pad, tk), lambda e: (0, 0)),   # x, resident
                    pl.BlockSpec((tk, tE), lambda e: (0, e)),      # w^T E-tiles
                    pl.BlockSpec((2, tE), lambda e: (0, e)),       # gamma/beta
                ],
                out_specs=pl.BlockSpec((B_pad, tE), lambda e: (0, e)),
            )
            dims = ("parallel",)
        else:
            kernel = functools.partial(_head_kernel_acc, b_actual=B, b_pad=B_pad)
            grid_spec = pltpu.PrefetchScalarGridSpec(
                num_scalar_prefetch=0,
                grid=(nE, nK),
                in_specs=[
                    pl.BlockSpec((B_pad, tk), lambda e, k: (0, k)),  # x K-tiles
                    pl.BlockSpec((tk, tE), lambda e, k: (k, e)),     # w^T tiles
                    pl.BlockSpec((2, tE), lambda e, k: (0, e)),      # gamma/beta
                ],
                out_specs=pl.BlockSpec((B_pad, tE), lambda e, k: (0, e)),
                scratch_shapes=[pltpu.VMEM((B_pad, tE), jnp.float32)],
            )
            dims = ("parallel", "arbitrary")

        out_p = pl.pallas_call(
            kernel,
            out_shape=jax.ShapeDtypeStruct((B_pad, E_pad), out_dtype),
            grid_spec=grid_spec,
            compiler_params=pltpu.CompilerParams(
                dimension_semantics=dims,
                vmem_limit_bytes=vmem_limit,
            ),
        )(x_p, w_t, gb)

        return out_p[:B, :E]

    return forward


def init_params(key, backbone_out_feats, embeddings_size):
    # xavier_normal_ for Linear weight: std = sqrt(2 / (fan_in + fan_out))
    std = (2.0 / (backbone_out_feats + embeddings_size)) ** 0.5
    weight = std * jax.random.normal(
        key, (embeddings_size, backbone_out_feats), dtype=jnp.float32
    )
    bias = jnp.zeros((embeddings_size,), dtype=jnp.float32)   # constant_(bias, 0)
    gamma = jnp.ones((embeddings_size,), dtype=jnp.float32)   # constant_(bn.weight, 1)
    beta = jnp.zeros((embeddings_size,), dtype=jnp.float32)   # constant_(bn.bias, 0)
    return weight, bias, gamma, beta


if __name__ == "__main__":
    B = 8        # batch
    F_IN = 32    # backbone_out_feats
    E = 64       # embeddings_size (small; exercises the E -> 128 lane padding)

    key = jax.random.PRNGKey(0)
    k_x, k_w = jax.random.split(key)
    x = jax.random.normal(k_x, (B, F_IN), dtype=jnp.float32)
    weight, bias, gamma, beta = init_params(k_w, F_IN, E)

    forward = make_base_head(weight, bias, gamma, beta, compute_dtype=jnp.bfloat16)
    out = forward(x)
    jax.block_until_ready(out)

    # Pure-JAX reference of the same semantics (bias included; it cancels).
    # Matmul at the same precision as the kernel: bf16 inputs, f32 accumulation.
    y_ref = jnp.dot(
        x.astype(jnp.bfloat16), weight.astype(jnp.bfloat16).T,
        preferred_element_type=jnp.float32,
    ) + bias
    m = y_ref.mean(axis=0, keepdims=True)
    v = ((y_ref - m) ** 2).mean(axis=0, keepdims=True)
    ref = (y_ref - m) / jnp.sqrt(v + BN_EPS) * gamma + beta

    assert out.shape == (B, E)
    assert jnp.allclose(out.astype(jnp.float32), ref, atol=2e-3, rtol=2e-3), \
        "mismatch vs reference"

    print("KERNEL_OK")
</pallas_src>

<mosaic_0001>
module attributes {stable_mosaic.version = 11 : i64} {
  func.func @_head_kernel_single(%arg0: i32, %arg1: memref<16x128xbf16, #tpu.memory_space<vmem>>, %arg2: memref<128x128xbf16, #tpu.memory_space<vmem>>, %arg3: memref<2x128xf32, #tpu.memory_space<vmem>>, %arg4: memref<16x128xf32, #tpu.memory_space<vmem>>) attributes {dimension_semantics = [#tpu.dimension_semantics<parallel>], iteration_bounds = array<i64: 1>, scalar_prefetch = 0 : i64, scratch_operands = 0 : i64, tpu.core_type = #tpu.core_type<tc>, window_params = [{pipeline_mode = #tpu.pipeline_mode<synchronous>, transform_indices = @transform_0, window_bounds = array<i64: 16, 128>}, {transform_indices = @transform_1, window_bounds = array<i64: 128, 128>}, {transform_indices = @transform_2, window_bounds = array<i64: 2, 128>}, {transform_indices = @transform_3, window_bounds = array<i64: 16, 128>}]} {
    %c0 = arith.constant 0 : index
    %c0_0 = arith.constant 0 : index
    %0 = vector.load %arg1[%c0, %c0_0] : memref<16x128xbf16, #tpu.memory_space<vmem>>, vector<16x128xbf16>
    %c0_1 = arith.constant 0 : index
    %c0_2 = arith.constant 0 : index
    %1 = vector.load %arg2[%c0_1, %c0_2] : memref<128x128xbf16, #tpu.memory_space<vmem>>, vector<128x128xbf16>
    %cst = arith.constant dense<0.000000e+00> : vector<16x128xf32>
    %2 = tpu.matmul %0, %1, %cst {dimension_numbers = #tpu.dot_dimension_numbers<[1], [0], [0], [1], [0, 0, 1, 1], [], []>} : vector<16x128xbf16>, vector<128x128xbf16>, vector<16x128xf32> -> vector<16x128xf32>
    %c0_3 = arith.constant 0 : index
    %c0_4 = arith.constant 0 : index
    %3 = vector.load %arg3[%c0_3, %c0_4] : memref<2x128xf32, #tpu.memory_space<vmem>>, vector<1x128xf32>
    %c1 = arith.constant 1 : index
    %c0_5 = arith.constant 0 : index
    %4 = vector.load %arg3[%c1, %c0_5] : memref<2x128xf32, #tpu.memory_space<vmem>>, vector<1x128xf32>
    %cst_6 = arith.constant dense<0.000000e+00> : vector<128xf32>
    %5 = vector.multi_reduction <add>, %2, %cst_6 [0] : vector<16x128xf32> to vector<128xf32>
    %6 = vector.shape_cast %5 : vector<128xf32> to vector<1x128xf32>
    %cst_7 = arith.constant 1.250000e-01 : f32
    %7 = vector.broadcast %cst_7 : f32 to vector<1x128xf32>
    %8 = arith.mulf %6, %7 : vector<1x128xf32>
    %9 = tpu.iota {dimensions = array<i32: 0>} : vector<16x128xi32>
    %c8_i32 = arith.constant 8 : i32
    %10 = vector.broadcast %c8_i32 : i32 to vector<16x128xi32>
    %11 = arith.cmpi slt, %9, %10 : vector<16x128xi32>
    %12 = vector.broadcast %8 : vector<1x128xf32> to vector<16x128xf32>
    %13 = arith.subf %2, %12 : vector<16x128xf32>
    %cst_8 = arith.constant 0.000000e+00 : f32
    %14 = vector.broadcast %cst_8 : f32 to vector<16x128xf32>
    %15 = arith.select %11, %13, %14 : vector<16x128xi1>, vector<16x128xf32>
    %16 = arith.mulf %15, %15 : vector<16x128xf32>
    %cst_9 = arith.constant dense<0.000000e+00> : vector<128xf32>
    %17 = vector.multi_reduction <add>, %16, %cst_9 [0] : vector<16x128xf32> to vector<128xf32>
    %18 = vector.shape_cast %17 : vector<128xf32> to vector<1x128xf32>
    %cst_10 = arith.constant 1.250000e-01 : f32
    %19 = vector.broadcast %cst_10 : f32 to vector<1x128xf32>
    %20 = arith.mulf %18, %19 : vector<1x128xf32>
    %cst_11 = arith.constant 9.99999974E-6 : f32
    %21 = vector.broadcast %cst_11 : f32 to vector<1x128xf32>
    %22 = arith.addf %20, %21 : vector<1x128xf32>
    %23 = math.rsqrt %22 : vector<1x128xf32>
    %24 = arith.mulf %3, %23 : vector<1x128xf32>
    %25 = arith.mulf %8, %24 : vector<1x128xf32>
    %26 = arith.subf %4, %25 : vector<1x128xf32>
    %27 = vector.broadcast %24 : vector<1x128xf32> to vector<16x128xf32>
    %28 = arith.mulf %2, %27 : vector<16x128xf32>
    %29 = vector.broadcast %26 : vector<1x128xf32> to vector<16x128xf32>
    %30 = arith.addf %28, %29 : vector<16x128xf32>
    %c0_12 = arith.constant 0 : index
    %c0_13 = arith.constant 0 : index
    %31 = vector.load %arg4[%c0_12, %c0_13] : memref<16x128xf32, #tpu.memory_space<vmem>>, vector<16x128xf32>
    tpu.vector_store %arg4[%c0_12, %c0_13], %30 {strides = array<i32>} : memref<16x128xf32, #tpu.memory_space<vmem>>, vector<16x128xf32>,
    return
  }
  func.func @transform_0(%arg0: i32) -> (i32, i32) {
    %c0_i32 = arith.constant 0 : i32
    %c0_i32_0 = arith.constant 0 : i32
    %c0_i32_1 = arith.constant 0 : i32
    return %c0_i32, %c0_i32_0 : i32, i32
  }
  func.func @transform_1(%arg0: i32) -> (i32, i32) {
    %c0_i32 = arith.constant 0 : i32
    %c0_i32_0 = arith.constant 0 : i32
    return %c0_i32, %arg0 : i32, i32
  }
  func.func @transform_2(%arg0: i32) -> (i32, i32) {
    %c0_i32 = arith.constant 0 : i32
    %c0_i32_0 = arith.constant 0 : i32
    return %c0_i32, %arg0 : i32, i32
  }
  func.func @transform_3(%arg0: i32) -> (i32, i32) {
    %c0_i32 = arith.constant 0 : i32
    %c0_i32_0 = arith.constant 0 : i32
    return %c0_i32, %arg0 : i32, i32
  }
}

</mosaic_0001>

<bundles_post_ra>
// kernel: forward.1
= control target key start
LH: loop header
LB: loop body
LE: loop exit
PB: predicated region body
PF: predicated region fallthrough
CT: control target
= control target key end

     0   :  { %8 = vsyncpa [#allocation3], 0  ;;  %s273_s12 = smov [#allocation2]   ;;  %s325_s0 = inlined_call_operand.vmem [shape: bf16[16,128], index: 0, kind: input, shape index: {}]   ;;  %s326_s1 = inlined_call_operand.hbm [shape: bf16[128,128], index: 1, kind: input, shape index: {}]   ;;  %s327_s2 = inlined_call_operand.vmem [shape: f32[2,128], index: 2, kind: input, shape index: {}]   ;;  %s328_s3 = inlined_call_operand.vmem [shape: f32[16,128], index: 3, kind: output, shape index: {}]  }
   0x1   :  { %s16_s13 = sshll.u32 %s273_s12, 4  ;;  %s249_s16 = scalar_lea.hbm %s326_s1, 1024  ;;  %s17_s13 = int_to_ptr.vmem [resolvable:$true] %s16_s13 }
   0x2   :  { %p250_p0 = scmp.ne.s32.totalorder %s326_s1, %s249_s16  ;;  %p253_p1 = scmp.lt.u32.totalorder %s249_s16, %s326_s1 }
   0x4   :  { %p255_p2 = pnand %p253_p1, %p250_p0 }
   0x6   :  { %258 = shalt.err (!%p255_p2)
}
   0x7   :  { %s259_s21 = scalar_lea.vmem %s17_s13, 1024  ;;  %p264_p4 = scmp.lt.s32.totalorder %s17_s13, %s17_s13 }
   0x8   :  { %p260_p3 = scmp.ne.s32.totalorder %s17_s13, %s259_s21  ;;  %p265_p5 = scmp.lt.s32.totalorder %s259_s21, %s259_s21 }
   0xa   :  { %p266_p6 = por %p265_p5, %p264_p4 }
   0xc   :  { %p267_p7 = pnand %p266_p6, %p260_p3 }
   0xe   :  { %270 = shalt.err (!%p267_p7)
}
   0xf   :  { %s274_s22 = smov 64   ;;  %s275_s23 = smov 4  }
  0x10   :  { %22 = dma.hbm_to_vmem [thread:$0]  %s326_s1, 1024, %s17_s13, [#allocation3], %s274_s22, %s274_s22, %s275_s23  }
  0x11   :  { %271 = dma.done.wait [#allocation3], 1024  }
  0x12   :  { %272 = vsyncadd [#allocation3], 4294966272  ;;  %v276_v0 = vmov 0.0   ;;  %vm277_vm0 = vmmov 0   ;;  %v238_v1 = vld [vmem:[#allocation2] sm:$0xff]   ;;  %v239_v2 = vld [vmem:[#allocation2 + $0x8] sm:$0xff]   ;;  %v176_v32 = vlaneseq }
  0x13   :  { %213 = vmatprep.subr.bf16.mxu0 %v276_v0  ;;  %229 = vmatprep.mubr.msk.bf16.mxu0 %vm277_vm0, %v276_v0  ;;  %v240_v3 = vld [vmem:[#allocation2 + $0x10] sm:$0xff]   ;;  %v241_v4 = vld [vmem:[#allocation2 + $0x18] sm:$0xff]   ;;  %v242_v5 = vld [vmem:[#allocation2 + $0x20] sm:$0xff]  }
  0x14   :  { %214 = vmatpush3.bf16.msra.mxu0 %v238_v1  ;;  %v243_v6 = vld [vmem:[#allocation2 + $0x28] sm:$0xff]   ;;  %v244_v7 = vld [vmem:[#allocation2 + $0x30] sm:$0xff]   ;;  %v245_v8 = vld [vmem:[#allocation2 + $0x38] sm:$0xff]   ;;  %v177_v33 = vshrl.u32 %v176_v32, 7 }
  0x15   :  { %215 = vmatprep.subr.bf16.mxu0 %v276_v0  ;;  %v246_v9 = vld [vmem:[%s325_s0] sm:$0xff]  }
  0x16   :  { %v142_v34 = vld [vmem:[%s327_s2] sm:$0x1]  ;;  %v178_v35 = vsub.s32 0, %v177_v33  ;;  %v143_v38 = vld [vmem:[%s327_s2 + $0x1] sm:$0x1] }
  0x18   :  { %216 = vmatpush3.bf16.msra.mxu0 %v239_v2 }
  0x19   :  { %217 = vmatprep.subr.bf16.mxu0 %v276_v0 }
  0x1c   :  { %218 = vmatpush3.bf16.msra.mxu0 %v240_v3 }
  0x1d   :  { %219 = vmatprep.subr.bf16.mxu0 %v276_v0 }
  0x20   :  { %220 = vmatpush3.bf16.msra.mxu0 %v241_v4 }
  0x21   :  { %221 = vmatprep.subr.bf16.mxu0 %v276_v0 }
  0x24   :  { %222 = vmatpush3.bf16.msra.mxu0 %v242_v5 }
  0x25   :  { %223 = vmatprep.subr.bf16.mxu0 %v276_v0 }
  0x28   :  { %224 = vmatpush3.bf16.msra.mxu0 %v243_v6 }
  0x29   :  { %225 = vmatprep.subr.bf16.mxu0 %v276_v0 }
  0x2c   :  { %226 = vmatpush3.bf16.msra.mxu0 %v244_v7 }
  0x2d   :  { %227 = vmatprep.subr.bf16.mxu0 %v276_v0 }
  0x30   :  { %228 = vmatpush3.bf16.msra.mxu0 %v245_v8 }
  0x33   :  { %230 = vmatmul.mubr.bf16.vlgmr.msra.gmra.mrb[0].mxu0 %v246_v9 }
 0x106   :  { %v135_v10 = vpop.f32.mrb[0].mxu0 }
 0x107   :  { %v231_v11 = vpop.f32.mrb[1].mxu0 }
 0x108   :  { %v138_v12 = vpop.f32.mrb[2].mxu0 }
 0x109   :  { %v144_v13 = vadd.f32 %v138_v12, %v135_v10  ;;  %v232_v14 = vpop.f32.mrb[3].mxu0 }
 0x10b   :  { %v145_v15 = vrot.slane %v144_v13, 4 }
 0x10d   :  { %v146_v16 = vadd.f32 %v145_v15, %v144_v13 }
 0x10f   :  { %v147_v17 = vrot.slane %v146_v16, 2 }
 0x111   :  { %v148_v18 = vadd.f32 %v147_v17, %v146_v16 }
 0x113   :  { %v149_v19 = vrot.slane %v148_v18, 1 }
 0x115   :  { %v150_v20 = vadd.f32 %v149_v19, %v148_v18 }
 0x117   :  { %v151_v21 = vmul.f32 0.125, %v150_v20 }
 0x119   :  { %v157_v22 = vsub.f32 %v135_v10, %v151_v21 }
 0x11b   :  { %v161_v23 = vmul.f32 %v157_v22, %v157_v22 }
 0x11d   :  { %v164_v24 = vrot.slane %v161_v23, 4 }
 0x11f   :  { %v165_v25 = vadd.f32 %v164_v24, %v161_v23 }
 0x121   :  { %v166_v26 = vrot.slane %v165_v25, 2 }
 0x123   :  { %v167_v27 = vadd.f32 %v166_v26, %v165_v25 }
 0x125   :  { %v168_v28 = vrot.slane %v167_v27, 1 }
 0x127   :  { %v169_v29 = vadd.f32 %v168_v28, %v167_v27 }
 0x129   :  { %v170_v30 = vmul.f32 0.125, %v169_v29 }
 0x12b   :  { %v171_v31 = vadd.f32 1e-05, %v170_v30 }
 0x12d   :  { %247 = vrsqrt.f32 %v171_v31 }
 0x137   :  { %v248_v36 = vpop.eup %247 }
 0x138   :  { %v173_v37 = vmul.f32 %v248_v36, %v142_v34 }
 0x13a   :  { %v174_v39 = vmul.f32 %v173_v37, %v151_v21  ;;  %v179_v40 = vrot.slane %v173_v37, %v178_v35 }
 0x13c   :  { %v175_v41 = vsub.f32 %v143_v38, %v174_v39  ;;  %v180_v42 = vmul.f32 %v179_v40, %v135_v10  ;;  %v181_v43 = vmul.f32 %v179_v40, %v138_v12 }
 0x13e   :  { %v185_v44 = vrot.slane %v175_v41, %v178_v35 }
 0x140   :  { %v186_v45 = vadd.f32 %v185_v44, %v180_v42  ;;  %v187_v46 = vadd.f32 %v185_v44, %v181_v43 }
 0x142   :  { %188 = vst [vmem:[%s328_s3] sm:$0xff] %v186_v45  ;;  %189 = vst [vmem:[%s328_s3 + $0x8] sm:$0xff] %v187_v46 }
 0x143   :  { %194 = vsyncpa [#allocation3], 1 }

</bundles_post_ra>
